<compile_context>
chip_gen: v5e
topology: v5e:2x2
jax: 0.10.0
libtpu: 0.0.40
codegen_flags: <defaults>
</compile_context>

<pallas_src>
import functools

import jax
import jax.numpy as jnp
import numpy as np
from jax import lax
from jax.experimental import pallas as pl
from jax.experimental.pallas import tpu as pltpu


# ----------------------------- static geometry ----------------------------- #
H = W = 16                                   # spatial size used by the test
HP, WP = H + 2, W + 2                        # zero-padded dims for the 3x3 convs
L_GRID = H * WP                              # flattened conv output grid (288)
L_PAD = ((HP * WP + 2 + 127) // 128) * 128   # lane width of activation buffers (384)
INTERIOR = WP + 1                            # flat offset of interior pixel (0, 0)
OFFS9 = tuple(kh * WP + kw for kh in range(3) for kw in range(3))
assert OFFS9[4] == INTERIOR
assert max(OFFS9) + L_GRID <= L_PAD


def _round8(n):
    return ((n + 7) // 8) * 8


# --------------------- pltpu.roll sign-convention probe --------------------- #

def _roll_is_numpy_convention():
    """Tiny runtime probe: does pltpu.roll follow np.roll's sign convention?"""
    def probe(x_ref, o_ref):
        o_ref[...] = pltpu.roll(x_ref[...], shift=1, axis=1)

    x = jnp.tile(jnp.arange(128, dtype=jnp.float32)[None, :], (8, 1))
    out = pl.pallas_call(
        probe, out_shape=jax.ShapeDtypeStruct((8, 128), jnp.float32))(x)
    # np.roll(x, 1, axis=1)[0, 0] == 127; the flipped convention gives 1.
    return bool(jax.device_get(out)[0, 0] == 127.0)


# ------------------------------ fused kernel ------------------------------- #

def _fused_kernel(x_ref, mask_ref, *refs, chans, np_roll):
    """Whole NoiseProjector forward for one image, entirely in VMEM.

    x_ref   : (1, chans[0], L_PAD)  zero-padded, spatially flattened input
    mask_ref: (1, L_PAD)            1.0 on valid output-grid columns, else 0.0
    refs    : 18 weight/bias refs (conv_first w/b, then per block:
              merged[dc1;one] w/b and dc2 w/b), then the output ref, then
              3 VMEM scratch activation buffers of shape (chans[-1], L_PAD).
    """
    wrefs = refs[:18]
    o_ref = refs[18]
    buf_a, buf_b, buf_h = refs[19:22]

    mask = mask_ref[...]                                   # (1, L_PAD) f32

    def roll_np(v, s):
        # np.roll(v, s, axis=1); pltpu.roll's sign convention is probed once
        # at setup time so either convention of the installed build works.
        amt = s % L_PAD
        if not np_roll:
            amt = (L_PAD - amt) % L_PAD
        return v if amt == 0 else pltpu.roll(v, shift=amt, axis=1)

    def taps_of(src_ref, cin):
        # 9 spatially shifted copies of the padded activation; tap t at
        # output-grid column o holds x_padded[:, o + OFFS9[t]].
        x = src_ref[0:cin, :]                              # (cin, L_PAD) f32
        return [roll_np(x, -off) for off in OFFS9]

    def im2col_of(taps):
        cin = taps[0].shape[0]
        if cin % 16 == 0:        # bf16 sublane tile = 16 rows: cast-then-concat
            return jnp.concatenate(
                [t.astype(jnp.bfloat16) for t in taps], axis=0)
        # small first layers: concat f32 then cast
        return jnp.concatenate(taps, axis=0).astype(jnp.bfloat16)

    def mm_bias(w_ref, b_ref, rhs_bf16):
        y = jnp.dot(w_ref[...], rhs_bf16,                  # (rows,9cin)x(9cin,L_PAD)
                    preferred_element_type=jnp.float32)
        return y + b_ref[...]                              # (rows, 1) lane-broadcast

    def store_padded(dst_ref, cout, y):
        # Zero the junk / out-of-grid columns and rotate so output-grid column
        # o lands at padded-grid position INTERIOR + o.  This writes full
        # (cout, L_PAD) rows, so the zero borders hold by construction.
        dst_ref[0:cout, :] = roll_np(y * mask, INTERIOR)

    # Load the pre-padded input image into the first activation buffer.
    buf_a[0:chans[0], :] = x_ref[0]

    # conv_first (3x3, chans[0] -> chans[1])
    y = mm_bias(wrefs[0], wrefs[1], im2col_of(taps_of(buf_a, chans[0])))
    store_padded(buf_b, chans[1], y)

    # L1..L4 ProjBlocks, ping-ponging the activation buffers.
    src, dst = buf_b, buf_a
    for i in range(4):
        cin, cout = chans[1 + i], chans[2 + i]
        cext = cout - cin
        w_m, b_m, w_d2, b_d2 = wrefs[2 + 4 * i: 6 + 4 * i]

        xt = taps_of(src, cin)
        center = xt[4]                          # interior of x on the output grid
        # merged matmul: rows [0:cout]        = dc1 3x3 conv (pre-ReLU)
        #                rows [cout:cout+cext] = one_conv 1x1 (center tap only)
        y = mm_bias(w_m, b_m, im2col_of(xt))    # (cout + cext, L_PAD) f32
        h = jnp.maximum(y[0:cout, :], 0.0)
        one = y[cout:cout + cext, :]
        # second half of double_conv: ReLU(h) -> 3x3
        store_padded(buf_h, cout, h)
        x2 = mm_bias(w_d2, b_d2, im2col_of(taps_of(buf_h, cout)))
        # channel concat + residual add, fused in-register.
        out = jnp.concatenate([center, one], axis=0) + x2   # (cout, L_PAD)

        if i < 3:
            store_padded(dst, cout, out)
            src, dst = dst, src
        else:
            o_ref[0] = out * mask               # final lane-dense (128, 384) store


# ------------------------------- JAX wrapper -------------------------------- #

def _prep_conv3x3_weight(w, cin_pad):
    cout, cin = w.shape[0], w.shape[1]
    wt = jnp.transpose(w, (0, 2, 3, 1))                    # (cout, 3, 3, cin)
    if cin_pad != cin:
        wt = jnp.pad(wt, ((0, 0), (0, 0), (0, 0), (0, cin_pad - cin)))
    return wt.reshape(cout, 9 * cin_pad).astype(jnp.bfloat16)


def _prep_bias(b):
    return b.reshape(-1, 1).astype(jnp.float32)


def _prep_block_merged(one_w, one_b, dc1_w, dc1_b):
    """Fold the 1x1 one_conv into the dc1 3x3 weight as extra output rows.

    The 1x1 weight lives at the center tap (index 4) of the 9-tap im2col; all
    other tap columns are exact zeros, so numerics are unchanged.
    """
    cout, cin = dc1_w.shape[0], dc1_w.shape[1]
    cext = one_w.shape[0]
    dc1_flat = jnp.transpose(dc1_w, (0, 2, 3, 1)).reshape(cout, 9 * cin)
    one_embed = jnp.zeros((cext, 9 * cin), jnp.float32)
    one_embed = one_embed.at[:, 4 * cin:5 * cin].set(one_w.reshape(cext, cin))
    w_m = jnp.concatenate([dc1_flat, one_embed], axis=0).astype(jnp.bfloat16)
    b_m = jnp.concatenate([dc1_b, one_b]).reshape(-1, 1).astype(jnp.float32)
    return w_m, b_m


def noise_projector(x_nchw, params, *, np_roll):
    """Fused Pallas forward. x_nchw: (N, c0, 16, 16) f32 -> (N, 32*c0, 16, 16)."""
    N, c0, Hx, Wx = x_nchw.shape
    assert (Hx, Wx) == (H, W)
    c0p = _round8(c0)                      # pad input channels so sublane concats stay aligned
    chans = (c0p, 2 * c0, 4 * c0, 8 * c0, 16 * c0, 32 * c0)
    c_last = chans[-1]

    # input: NCHW -> zero-padded, spatially flattened (N, c0p, L_PAD)
    xp = jnp.pad(x_nchw, ((0, 0), (0, c0p - c0), (1, 1), (1, 1)))
    xf = jnp.pad(xp.reshape(N, c0p, HP * WP),
                 ((0, 0), (0, 0), (0, L_PAD - HP * WP))).astype(jnp.float32)

    # validity mask over the flattened output grid (precomputed, passed in)
    mask_np = np.zeros((1, L_PAD), np.float32)
    mask_np[0, :L_GRID] = (np.arange(L_GRID) % WP < W).astype(np.float32)
    mask = jnp.asarray(mask_np)

    # weights: bf16, matmul-ready, VMEM-resident for the whole forward
    w_cf, b_cf = params["conv_first"]
    flat = [_prep_conv3x3_weight(w_cf, c0p), _prep_bias(b_cf)]
    for name in ("L1", "L2", "L3", "L4"):
        p = params[name]
        ow, ob = p["one_conv"]
        d1w, d1b = p["dc1"]
        d2w, d2b = p["dc2"]
        w_m, b_m = _prep_block_merged(ow, ob, d1w, d1b)
        flat += [w_m, b_m,
                 _prep_conv3x3_weight(d2w, d2w.shape[1]), _prep_bias(d2b)]

    kernel = functools.partial(_fused_kernel, chans=chans, np_roll=np_roll)

    def const_spec(arr):
        return pl.BlockSpec(arr.shape, lambda n: (0,) * arr.ndim)

    in_specs = ([pl.BlockSpec((1, c0p, L_PAD), lambda n: (n, 0, 0)),
                 const_spec(mask)]
                + [const_spec(a) for a in flat])

    out = pl.pallas_call(
        kernel,
        out_shape=jax.ShapeDtypeStruct((N, c_last, L_PAD), jnp.float32),
        grid=(N,),
        in_specs=in_specs,
        out_specs=pl.BlockSpec((1, c_last, L_PAD), lambda n: (n, 0, 0)),
        scratch_shapes=[pltpu.VMEM((c_last, L_PAD), jnp.float32)
                        for _ in range(3)],
        compiler_params=pltpu.CompilerParams(
            dimension_semantics=("parallel",),
            vmem_limit_bytes=32 * 1024 * 1024),
    )(xf, mask, *flat)

    # Strip the padded-width junk columns: (N, C, L_PAD) -> (N, C, H, W).
    return out[:, :, :L_GRID].reshape(N, c_last, H, WP)[..., :W]


# ------------------------- parameters (plain JAX) --------------------------- #
# TODO(synk): spectral_norm's power iteration is a training-time
# parametrization; it is applied once at parameter-setup time (below) rather
# than inside the Pallas forward kernel.

def _spectral_normalize(w, key, n_iter=30):
    """W / sigma(W), sigma via power iteration on the (Cout, Cin*K*K) matrix."""
    wm = w.reshape(w.shape[0], -1)
    u = jax.random.normal(key, (wm.shape[0],), jnp.float32)
    u = u / (jnp.linalg.norm(u) + 1e-12)
    v = jnp.zeros((wm.shape[1],), jnp.float32)
    for _ in range(n_iter):
        v = wm.T @ u
        v = v / (jnp.linalg.norm(v) + 1e-12)
        u = wm @ v
        u = u / (jnp.linalg.norm(u) + 1e-12)
    sigma = u @ (wm @ v)
    return w / sigma


def _init_conv(key, cin, cout, k):
    kw_, kb_, ku_ = jax.random.split(key, 3)
    fan_in = cin * k * k
    bound = 1.0 / float(np.sqrt(fan_in))
    w = jax.random.uniform(kw_, (cout, cin, k, k), jnp.float32, -bound, bound)
    b = jax.random.uniform(kb_, (cout,), jnp.float32, -bound, bound)
    w = _spectral_normalize(w, ku_)
    return w, b


def init_params(key, c0):
    keys = iter(jax.random.split(key, 16))
    params = {"conv_first": _init_conv(next(keys), c0, 2 * c0, 3)}
    chan = [2 * c0, 4 * c0, 8 * c0, 16 * c0, 32 * c0]
    for i, name in enumerate(["L1", "L2", "L3", "L4"]):
        cin, cout = chan[i], chan[i + 1]
        params[name] = {
            "one_conv": _init_conv(next(keys), cin, cout - cin, 1),
            "dc1": _init_conv(next(keys), cin, cout, 3),
            "dc2": _init_conv(next(keys), cout, cout, 3),
        }
    return params


# --------------------------- pure-JAX reference ----------------------------- #

def _conv_ref(x, w, b, relu=False):
    out = lax.conv_general_dilated(
        x, w, window_strides=(1, 1), padding="SAME",
        dimension_numbers=("NCHW", "OIHW", "NCHW"),
        precision=lax.Precision.HIGHEST)
    out = out + b[None, :, None, None]
    return jnp.maximum(out, 0.0) if relu else out


def _proj_block_ref(x, p):
    x1 = jnp.concatenate([x, _conv_ref(x, *p["one_conv"])], axis=1)
    x2 = _conv_ref(_conv_ref(x, *p["dc1"], relu=True), *p["dc2"])
    return x1 + x2


def noise_projector_ref(x_nchw, params):
    x = _conv_ref(x_nchw, *params["conv_first"])
    for name in ("L1", "L2", "L3", "L4"):
        x = _proj_block_ref(x, params[name])
    return x


# ----------------------------------- main ----------------------------------- #

if __name__ == "__main__":
    key = jax.random.PRNGKey(0)
    kx, kp = jax.random.split(key)

    C0, N = 4, 2
    x = jax.random.normal(kx, (N, C0, H, W), jnp.float32)
    params = init_params(kp, C0)

    np_roll = _roll_is_numpy_convention()

    fwd = jax.jit(functools.partial(noise_projector, np_roll=np_roll))
    out = jax.block_until_ready(fwd(x, params))
    assert out.shape == (N, 32 * C0, H, W), out.shape

    ref = jax.block_until_ready(noise_projector_ref(x, params))
    # Kernel matmuls use bf16 operands with f32 accumulation; reference is
    # f32 (HIGHEST precision), so the tolerance covers the bf16 error budget.
    np.testing.assert_allclose(np.asarray(out), np.asarray(ref),
                               rtol=5e-2, atol=5e-2)

    print("KERNEL_OK")
</pallas_src>

<mosaic_0001>
module attributes {stable_mosaic.version = 11 : i64} {
  func.func @probe(%arg0: memref<8x128xf32, #tpu.memory_space<vmem>>, %arg1: memref<8x128xf32, #tpu.memory_space<vmem>>) attributes {dimension_semantics = [], scalar_prefetch = 0 : i64, scratch_operands = 0 : i64, tpu.core_type = #tpu.core_type<tc>} {
    %c0 = arith.constant 0 : index
    %c0_0 = arith.constant 0 : index
    %0 = vector.load %arg0[%c0, %c0_0] : memref<8x128xf32, #tpu.memory_space<vmem>>, vector<8x128xf32>
    %c1_i32 = arith.constant 1 : i32
    %1 = tpu.dynamic_rotate %0 by %c1_i32 dim 1 : vector<8x128xf32>, i32 -> vector<8x128xf32>
    %c0_1 = arith.constant 0 : index
    %c0_2 = arith.constant 0 : index
    %2 = vector.load %arg1[%c0_1, %c0_2] : memref<8x128xf32, #tpu.memory_space<vmem>>, vector<8x128xf32>
    tpu.vector_store %arg1[%c0_1, %c0_2], %1 {strides = array<i32>} : memref<8x128xf32, #tpu.memory_space<vmem>>, vector<8x128xf32>,
    return
  }
}

</mosaic_0001>

<bundles_post_ra>
// kernel: tpu_custom_call.1
= control target key start
LH: loop header
LB: loop body
LE: loop exit
PB: predicated region body
PF: predicated region fallthrough
CT: control target
= control target key end

     0   :  { %6 = vsyncpa [#allocation3], 0  ;;  %s118_s0 = inlined_call_operand.hbm [shape: f32[8,128], index: 0, kind: input, shape index: {}]   ;;  %s119_s1 = inlined_call_operand.hbm [shape: f32[8,128], index: 1, kind: output, shape index: {}]  }
   0x1   :  { %7 = vsyncpa [#allocation4], 0  ;;  %s13_s8 = sshll.u32 %s118_s0, 4  ;;  %s99_s9 = smov [#allocation2]   ;;  %s14_s8 = int_to_ptr.hbm [resolvable:$true] %s13_s8 }
   0x2   :  { %s15_s10 = sshll.u32 %s99_s9, 4  ;;  %s16_s10 = int_to_ptr.vmem [resolvable:$true] %s15_s10 }
   0x3   :  { %18 = dma.hbm_to_vmem [thread:$0]  %s14_s8, 128, %s16_s10, [#allocation3]  }
   0x4   :  { %95 = dma.done.wait [#allocation3], 128  }
   0x5   :  { %96 = vsyncadd [#allocation3], 4294967168  ;;  %v23_v0 = vld [vmem:[#allocation2] sm:$0xff]  ;;  %s100_s11 = smov 1   ;;  %s101_s12 = smov [#allocation5]  }
   0x6   :  { %24 = vrot.lane.b32.xlu0 %v23_v0, %s100_s11  ;;  %s32_s13 = sshll.u32 %s101_s12, 4  ;;  %s34_s16 = sshll.u32 %s119_s1, 4  ;;  %s33_s13 = int_to_ptr.vmem [resolvable:$true] %s32_s13  ;;  %s35_s16 = int_to_ptr.hbm [resolvable:$true] %s34_s16 }
  0x78   :  { %v25_v1 = vpop.permute.xlu0 %24 }
  0x79   :  { %26 = vst [vmem:[#allocation5] sm:$0xff] %v25_v1 }
  0x7a   :  { %37 = dma.vmem_to_hbm [thread:$0]  %s33_s13, 128, %s35_s16, [#allocation4]  }
  0x7b   :  { %97 = dma.done.wait [#allocation4], 128  }
  0x7c   :  { %98 = vsyncadd [#allocation4], 4294967168 }
  0x7d   :  { %42 = vsyncpa [#allocation3], 1 }
  0x7e   :  { %43 = vsyncpa [#allocation4], 1 }

</bundles_post_ra>
